<compile_context>
chip_gen: v5e
topology: v5e:2x2
jax: 0.10.0
libtpu: 0.0.40
codegen_flags: <defaults>
</compile_context>

<pallas_src>
import numpy as np
import jax
import jax.numpy as jnp
from jax import lax
from jax.experimental import pallas as pl
from jax.experimental.pallas import tpu as pltpu

# Leave headroom under v7x's 64 MiB physical VMEM (tiles here are small anyway).
_VMEM_LIMIT = 48 * 1024 * 1024


def _round_up(x, m):
    return (x + m - 1) // m * m


def _row_tile(n_rows, base, target=512):
    """Largest multiple of `base` that divides n_rows and is <= target."""
    t = base
    while t * 2 <= target and n_rows % (t * 2) == 0:
        t *= 2
    return min(t, n_rows)


# ----------------------- gate pre-projection (row-tiled matmul) --------------

def gate_proj_kernel(x_ref, w_ref, b_ref, y_ref):
    # x: (rows, Din) bf16, w: (Din, 8H) bf16 = [W_ih_fwd^T | W_ih_bwd^T], b: (1, 8H) f32
    y_ref[...] = (jnp.dot(x_ref[...], w_ref[...],
                          preferred_element_type=jnp.float32)
                  + b_ref[...])


def run_gate_proj(x, w, b, rows_tile):
    N, Din = x.shape
    G8 = w.shape[1]
    return pl.pallas_call(
        gate_proj_kernel,
        out_shape=jax.ShapeDtypeStruct((N, G8), jnp.float32),
        grid_spec=pltpu.PrefetchScalarGridSpec(
            num_scalar_prefetch=0,
            grid=(N // rows_tile,),
            in_specs=[pl.BlockSpec((rows_tile, Din), lambda r: (r, 0)),
                      pl.BlockSpec(w.shape, lambda r: (0, 0)),
                      pl.BlockSpec(b.shape, lambda r: (0, 0))],
            out_specs=pl.BlockSpec((rows_tile, G8), lambda r: (r, 0)),
        ),
        compiler_params=pltpu.CompilerParams(
            dimension_semantics=("parallel",),
            vmem_limit_bytes=_VMEM_LIMIT),
    )(x, w, b)


def gate_proj2_kernel(xf_ref, xb_ref, wf_ref, wb_ref, b_ref, y_ref):
    # layer > 0: consume fwd/bwd hidden halves directly (no inter-layer concat)
    xf = xf_ref[...].astype(jnp.bfloat16)
    xb = xb_ref[...].astype(jnp.bfloat16)
    y_ref[...] = (jnp.dot(xf, wf_ref[...], preferred_element_type=jnp.float32)
                  + jnp.dot(xb, wb_ref[...], preferred_element_type=jnp.float32)
                  + b_ref[...])


def run_gate_proj2(xf, xb, wf, wb, b, rows_tile):
    N, H = xf.shape
    G8 = wf.shape[1]
    return pl.pallas_call(
        gate_proj2_kernel,
        out_shape=jax.ShapeDtypeStruct((N, G8), jnp.float32),
        grid_spec=pltpu.PrefetchScalarGridSpec(
            num_scalar_prefetch=0,
            grid=(N // rows_tile,),
            in_specs=[pl.BlockSpec((rows_tile, H), lambda r: (r, 0)),
                      pl.BlockSpec((rows_tile, H), lambda r: (r, 0)),
                      pl.BlockSpec(wf.shape, lambda r: (0, 0)),
                      pl.BlockSpec(wb.shape, lambda r: (0, 0)),
                      pl.BlockSpec(b.shape, lambda r: (0, 0))],
            out_specs=pl.BlockSpec((rows_tile, G8), lambda r: (r, 0)),
        ),
        compiler_params=pltpu.CompilerParams(
            dimension_semantics=("parallel",),
            vmem_limit_bytes=_VMEM_LIMIT),
    )(xf, xb, wf, wb, b)


# ----------------------- fused bidirectional LSTM recurrence -----------------

def bilstm_kernel(gxf_ref, gxb_ref, mkf_ref, mkb_ref, whf_ref, whb_ref,
                  outf_ref, outb_ref, hf_sc, hb_sc, cf_sc, cb_sc):
    c_idx = pl.program_id(0)
    Tc, Bp, G = gxf_ref.shape            # G = 4H
    H = G // 4

    @pl.when(c_idx == 0)
    def _():
        hf_sc[...] = jnp.zeros_like(hf_sc)
        hb_sc[...] = jnp.zeros_like(hb_sc)
        cf_sc[...] = jnp.zeros_like(cf_sc)
        cb_sc[...] = jnp.zeros_like(cb_sc)

    whf = whf_ref[...]                   # (H, 4H) forward recurrent weight
    whb = whb_ref[...]                   # (H, 4H) backward recurrent weight

    # constant lane mask for the cell ("g") gate, hoisted out of the time loop
    lane = lax.broadcasted_iota(jnp.int32, (1, G), 1)
    is_g = jnp.logical_and(lane >= 2 * H, lane < 3 * H)

    def cell(pre, c_prev):
        # full-vreg transcendentals (EUP); tanh only on cell-gate lanes
        act = jnp.where(is_g, jnp.tanh(pre), jax.nn.sigmoid(pre))
        i_g = act[:, 0 * H:1 * H]
        f_g = act[:, 1 * H:2 * H]
        g_g = act[:, 2 * H:3 * H]
        o_g = act[:, 3 * H:4 * H]
        c_new = f_g * c_prev + i_g * g_g
        return o_g * jnp.tanh(c_new), c_new

    # TODO(synk): pin whf/whb in MXU weight registers across the unrolled steps
    # via pltpu.matmul_push_rhs/matmul_acc_lhs/matmul_pop (RHS is loop-constant).
    def step(i, carry):
        hf, hb, cf, cb = carry                           # four (Bp, H) arrays
        j = Tc - 1 - i                                   # local backward index
        pre_f = jnp.dot(hf, whf, preferred_element_type=jnp.float32) + gxf_ref[i]
        pre_b = jnp.dot(hb, whb, preferred_element_type=jnp.float32) + gxb_ref[j]
        hf_n, cf_n = cell(pre_f, cf)
        hb_n, cb_n = cell(pre_b, cb)
        # hoisted packed-sequence validity masks (fwd time / bwd time)
        mf = mkf_ref[i]                                  # (Bp, 1)
        mb = mkb_ref[j]                                  # (Bp, 1)
        hf_n = hf_n * mf
        cf_n = cf_n * mf
        hb_n = hb_n * mb
        cb_n = cb_n * mb
        outf_ref[i] = hf_n
        outb_ref[j] = hb_n
        return hf_n, hb_n, cf_n, cb_n

    hf, hb, cf, cb = lax.fori_loop(
        0, Tc, step, (hf_sc[...], hb_sc[...], cf_sc[...], cb_sc[...]), unroll=4)
    hf_sc[...] = hf
    hb_sc[...] = hb
    cf_sc[...] = cf
    cb_sc[...] = cb


def run_bilstm(gates, valid, whf, whb, time_chunk):
    """gates: (Tpad, Bp, 8H) lane-dense; valid: (Tpad, Bp, 1) mask.
    Returns (out_f, out_b): (Tpad, Bp, H) f32."""
    Tpad, Bp, G8 = gates.shape
    G = G8 // 2
    H = G // 4
    Tc = time_chunk
    nc = Tpad // Tc
    grid_spec = pltpu.PrefetchScalarGridSpec(
        num_scalar_prefetch=0,
        grid=(nc,),
        in_specs=[
            # fwd / bwd halves of the SAME lane-dense gate tensor:
            pl.BlockSpec((Tc, Bp, G), lambda c: (c, 0, 0)),           # fwd half
            pl.BlockSpec((Tc, Bp, G), lambda c: (nc - 1 - c, 0, 1)),  # bwd half, reversed time
            # validity mask, forward-time and reversed-time views of the SAME array:
            pl.BlockSpec((Tc, Bp, 1), lambda c: (c, 0, 0)),
            pl.BlockSpec((Tc, Bp, 1), lambda c: (nc - 1 - c, 0, 0)),
            pl.BlockSpec(whf.shape, lambda c: (0, 0)),
            pl.BlockSpec(whb.shape, lambda c: (0, 0)),
        ],
        out_specs=[
            pl.BlockSpec((Tc, Bp, H), lambda c: (c, 0, 0)),           # out fwd
            pl.BlockSpec((Tc, Bp, H), lambda c: (nc - 1 - c, 0, 0)),  # out bwd (reversed)
        ],
        scratch_shapes=[pltpu.VMEM((Bp, H), jnp.float32)] * 4,        # hf, hb, cf, cb
    )
    return pl.pallas_call(
        bilstm_kernel,
        out_shape=(jax.ShapeDtypeStruct((Tpad, Bp, H), jnp.float32),
                   jax.ShapeDtypeStruct((Tpad, Bp, H), jnp.float32)),
        grid_spec=grid_spec,
        compiler_params=pltpu.CompilerParams(
            dimension_semantics=("arbitrary",),
            vmem_limit_bytes=_VMEM_LIMIT),
    )(gates, gates, valid, valid, whf, whb)


# ----------------------- fc -> ELU(0.01) -> classifier head ------------------

def head_kernel(xf_ref, xb_ref, w1f_ref, w1b_ref, b1_ref, w2_ref, b2_ref, o_ref):
    xf = xf_ref[...].astype(jnp.bfloat16)
    xb = xb_ref[...].astype(jnp.bfloat16)
    h = (jnp.dot(xf, w1f_ref[...], preferred_element_type=jnp.float32)
         + jnp.dot(xb, w1b_ref[...], preferred_element_type=jnp.float32)
         + b1_ref[...])
    alpha = 0.01                                           # nn.ELU(alpha=0.01)
    e = jnp.where(h > 0, h, alpha * (jnp.exp(jnp.minimum(h, 0.0)) - 1.0))
    o_ref[...] = (jnp.dot(e.astype(jnp.bfloat16), w2_ref[...],
                          preferred_element_type=jnp.float32) + b2_ref[...])


def run_head(xf, xb, w1f, w1b, b1, w2, b2, rows_tile):
    N, H = xf.shape
    Tp = w2.shape[1]                       # tag_size padded to a 128 multiple
    return pl.pallas_call(
        head_kernel,
        out_shape=jax.ShapeDtypeStruct((N, Tp), jnp.float32),
        grid_spec=pltpu.PrefetchScalarGridSpec(
            num_scalar_prefetch=0,
            grid=(N // rows_tile,),
            in_specs=[pl.BlockSpec((rows_tile, H), lambda r: (r, 0)),
                      pl.BlockSpec((rows_tile, H), lambda r: (r, 0)),
                      pl.BlockSpec(w1f.shape, lambda r: (0, 0)),
                      pl.BlockSpec(w1b.shape, lambda r: (0, 0)),
                      pl.BlockSpec(b1.shape, lambda r: (0, 0)),
                      pl.BlockSpec(w2.shape, lambda r: (0, 0)),
                      pl.BlockSpec(b2.shape, lambda r: (0, 0))],
            out_specs=pl.BlockSpec((rows_tile, Tp), lambda r: (r, 0)),
        ),
        compiler_params=pltpu.CompilerParams(
            dimension_semantics=("parallel",),
            vmem_limit_bytes=_VMEM_LIMIT),
    )(xf, xb, w1f, w1b, b1, w2, b2)


# ----------------------- params ----------------------------------------------

class BiLSTMGloveParams:
    def __init__(self, key, vocab_size, embedding_dim, linear_out_dim,
                 hidden_dim, lstm_layers, bidirectional, tag_size):
        assert bidirectional, "fused kernel implements the bidirectional path"
        H = hidden_dim
        assert (4 * H) % 128 == 0, "kernel assumes 4*hidden_dim % 128 == 0"
        self.hidden_dim = H
        self.lstm_layers = lstm_layers
        self.embedding_dim = embedding_dim
        self.linear_out_dim = linear_out_dim
        self.tag_size = tag_size
        self.lin_pad = _round_up(linear_out_dim, 128)
        self.tag_pad = _round_up(tag_size, 128)

        k = 1.0 / np.sqrt(H)
        keys = jax.random.split(key, 8 * lstm_layers + 8)
        ki = iter(keys)
        # synthetic, deterministic stand-in for the GloVe embedding matrix
        self.emb_matrix = jax.random.normal(next(ki), (vocab_size, embedding_dim),
                                            jnp.float32)
        self.lstm = []
        for layer in range(lstm_layers):
            in_dim = embedding_dim if layer == 0 else 2 * H
            dirs = []
            for _ in range(2):
                w_ih = jax.random.uniform(next(ki), (4 * H, in_dim), jnp.float32, -k, k)
                w_hh = jax.random.uniform(next(ki), (4 * H, H), jnp.float32, -k, k)
                b_ih = jax.random.uniform(next(ki), (4 * H,), jnp.float32, -k, k)
                b_hh = jax.random.uniform(next(ki), (4 * H,), jnp.float32, -k, k)
                dirs.append((w_ih, w_hh, b_ih, b_hh))
            (wif, whf, bif, bhf), (wib, whb, bib, bhb) = dirs
            # input-projection weights, lane-stacked for both directions: (in_dim, 8H), bf16
            wih_all = jnp.concatenate([wif.T, wib.T], axis=1).astype(jnp.bfloat16)
            b_all = jnp.concatenate([bif + bhf, bib + bhb]).reshape(1, 8 * H)
            self.lstm.append(dict(
                wih_all=wih_all, b_all=b_all,
                whh_f=whf.T.astype(jnp.float32),        # (H, 4H)
                whh_b=whb.T.astype(jnp.float32)))       # (H, 4H)

        D2 = 2 * H
        kf = 1.0 / np.sqrt(D2)
        fc_w = jax.random.uniform(next(ki), (D2, linear_out_dim), jnp.float32, -kf, kf)
        fc_b = jax.random.uniform(next(ki), (linear_out_dim,), jnp.float32, -kf, kf)
        kc = 1.0 / np.sqrt(linear_out_dim)
        cls_w = jax.random.uniform(next(ki), (linear_out_dim, tag_size), jnp.float32, -kc, kc)
        cls_b = jax.random.uniform(next(ki), (tag_size,), jnp.float32, -kc, kc)

        Lp, Tp = self.lin_pad, self.tag_pad
        # lane-pad the head to 128-wide outputs (unmasked stores); slice outside
        w1 = jnp.zeros((D2, Lp), jnp.float32).at[:, :linear_out_dim].set(fc_w)
        self.fc_wf = w1[:H].astype(jnp.bfloat16)         # consumed vs. fwd hidden
        self.fc_wb = w1[H:].astype(jnp.bfloat16)         # consumed vs. bwd hidden
        self.fc_b = jnp.zeros((1, Lp), jnp.float32).at[0, :linear_out_dim].set(fc_b)
        w2 = jnp.zeros((Lp, Tp), jnp.float32).at[:linear_out_dim, :tag_size].set(cls_w)
        self.cls_w = w2.astype(jnp.bfloat16)
        self.cls_b = jnp.zeros((1, Tp), jnp.float32).at[0, :tag_size].set(cls_b)


# ----------------------- forward ----------------------------------------------

def bilstm_glove_forward(params, sen, sen_len_np, time_chunk=16):
    """sen: (B, T) int32 token ids; sen_len_np: host lengths (as pack_padded needs)."""
    B, T = sen.shape
    H = params.hidden_dim
    lengths_np = np.asarray(sen_len_np)
    T_out = int(lengths_np.max())                         # pad_packed_sequence length
    Tc = max(1, min(time_chunk, T_out))
    nc = int(pl.cdiv(T_out, Tc))
    Tpad = nc * Tc
    Bp = max(8, _round_up(B, 8))                          # fill the sublane dimension

    lengths = jnp.zeros((Bp,), jnp.int32).at[:B].set(
        jnp.asarray(lengths_np, jnp.int32))               # padded rows -> length 0

    # time-major ids, padded on time and batch (padded positions fully masked)
    sen_t = jnp.transpose(sen[:, :T_out], (1, 0)).astype(jnp.int32)    # (T_out, B)
    sen_t = jnp.pad(sen_t, ((0, Tpad - T_out), (0, Bp - B)))
    # validity mask valid[t, b] = t < len_b (shared by fwd and bwd directions)
    valid = (jnp.arange(Tpad, dtype=jnp.int32)[:, None]
             < lengths[None, :]).astype(jnp.float32).reshape(Tpad, Bp, 1)

    # embedding lookup kept as JAX glue (gather), cast to bf16 for the MXU
    emb = jnp.take(params.emb_matrix, sen_t, axis=0).astype(jnp.bfloat16)

    N = Tpad * Bp
    rows_tile = _row_tile(N, Tc * Bp)

    out_f = out_b = None
    for layer in range(params.lstm_layers):
        lw = params.lstm[layer]
        if layer == 0:
            gates = run_gate_proj(emb.reshape(N, -1), lw["wih_all"], lw["b_all"],
                                  rows_tile)
        else:
            gates = run_gate_proj2(out_f.reshape(N, H), out_b.reshape(N, H),
                                   lw["wih_all"][:H], lw["wih_all"][H:],
                                   lw["b_all"], rows_tile)
        gates = gates.reshape(Tpad, Bp, 8 * H)
        out_f, out_b = run_bilstm(gates, valid, lw["whh_f"], lw["whh_b"], Tc)

    # dropout is identity in eval mode
    # TODO(synk): training-mode dropout (random mask + 1/(1-p) scaling) not applied.
    pred = run_head(out_f.reshape(N, H), out_b.reshape(N, H),
                    params.fc_wf, params.fc_wb, params.fc_b,
                    params.cls_w, params.cls_b, rows_tile)           # (N, tag_pad)
    pred = pred.reshape(Tpad, Bp, params.tag_pad)[:T_out, :B, :params.tag_size]
    return jnp.transpose(pred, (1, 0, 2))                            # (B, T_out, tag)


if __name__ == "__main__":
    vocab_size = 50
    embedding_dim = 32
    linear_out_dim = 16
    hidden_dim = 32
    lstm_layers = 1
    bidirectional = True
    tag_size = 8
    B, T = 2, 8

    key = jax.random.PRNGKey(0)
    kp, ks = jax.random.split(key)
    params = BiLSTMGloveParams(kp, vocab_size, embedding_dim, linear_out_dim,
                               hidden_dim, lstm_layers, bidirectional, tag_size)

    sen = jax.random.randint(ks, (B, T), 0, vocab_size, jnp.int32)
    sen_len = np.array([8, 5], dtype=np.int32)   # host-side lengths (as PyTorch requires)

    pred = bilstm_glove_forward(params, sen, sen_len)
    pred = jax.block_until_ready(pred)
    assert pred.shape == (B, int(sen_len.max()), tag_size)
    assert bool(jnp.all(jnp.isfinite(pred)))
    print("KERNEL_OK")
</pallas_src>

<mosaic_0001>
module attributes {stable_mosaic.version = 11 : i64} {
  func.func @gate_proj_kernel(%arg0: i32, %arg1: memref<64x32xbf16, #tpu.memory_space<vmem>>, %arg2: memref<32x256xbf16, #tpu.memory_space<vmem>>, %arg3: memref<1x256xf32, #tpu.memory_space<vmem>>, %arg4: memref<64x256xf32, #tpu.memory_space<vmem>>) attributes {dimension_semantics = [#tpu.dimension_semantics<parallel>], iteration_bounds = array<i64: 1>, scalar_prefetch = 0 : i64, scratch_operands = 0 : i64, tpu.core_type = #tpu.core_type<tc>, window_params = [{transform_indices = @transform_0, window_bounds = array<i64: 64, 32>}, {pipeline_mode = #tpu.pipeline_mode<synchronous>, transform_indices = @transform_1, window_bounds = array<i64: 32, 256>}, {pipeline_mode = #tpu.pipeline_mode<synchronous>, transform_indices = @transform_2, window_bounds = array<i64: 1, 256>}, {transform_indices = @transform_3, window_bounds = array<i64: 64, 256>}]} {
    %c0 = arith.constant 0 : index
    %c0_0 = arith.constant 0 : index
    %0 = vector.load %arg1[%c0, %c0_0] : memref<64x32xbf16, #tpu.memory_space<vmem>>, vector<64x32xbf16>
    %c0_1 = arith.constant 0 : index
    %c0_2 = arith.constant 0 : index
    %1 = vector.load %arg2[%c0_1, %c0_2] : memref<32x256xbf16, #tpu.memory_space<vmem>>, vector<32x256xbf16>
    %cst = arith.constant dense<0.000000e+00> : vector<64x256xf32>
    %2 = tpu.matmul %0, %1, %cst {dimension_numbers = #tpu.dot_dimension_numbers<[1], [0], [0], [1], [0, 0, 1, 1], [], []>} : vector<64x32xbf16>, vector<32x256xbf16>, vector<64x256xf32> -> vector<64x256xf32>
    %c0_3 = arith.constant 0 : index
    %c0_4 = arith.constant 0 : index
    %3 = vector.load %arg3[%c0_3, %c0_4] : memref<1x256xf32, #tpu.memory_space<vmem>>, vector<1x256xf32>
    %4 = vector.broadcast %3 : vector<1x256xf32> to vector<64x256xf32>
    %5 = arith.addf %2, %4 : vector<64x256xf32>
    %c0_5 = arith.constant 0 : index
    %c0_6 = arith.constant 0 : index
    %6 = vector.load %arg4[%c0_5, %c0_6] : memref<64x256xf32, #tpu.memory_space<vmem>>, vector<64x256xf32>
    tpu.vector_store %arg4[%c0_5, %c0_6], %5 {strides = array<i32>} : memref<64x256xf32, #tpu.memory_space<vmem>>, vector<64x256xf32>,
    return
  }
  func.func @transform_0(%arg0: i32) -> (i32, i32) {
    %c0_i32 = arith.constant 0 : i32
    %c0_i32_0 = arith.constant 0 : i32
    return %arg0, %c0_i32 : i32, i32
  }
  func.func @transform_1(%arg0: i32) -> (i32, i32) {
    %c0_i32 = arith.constant 0 : i32
    %c0_i32_0 = arith.constant 0 : i32
    %c0_i32_1 = arith.constant 0 : i32
    return %c0_i32, %c0_i32_0 : i32, i32
  }
  func.func @transform_2(%arg0: i32) -> (i32, i32) {
    %c0_i32 = arith.constant 0 : i32
    %c0_i32_0 = arith.constant 0 : i32
    %c0_i32_1 = arith.constant 0 : i32
    return %c0_i32, %c0_i32_0 : i32, i32
  }
  func.func @transform_3(%arg0: i32) -> (i32, i32) {
    %c0_i32 = arith.constant 0 : i32
    %c0_i32_0 = arith.constant 0 : i32
    return %arg0, %c0_i32 : i32, i32
  }
}

</mosaic_0001>

<bundles_post_ra>
// kernel: tpu_custom_call.1
= control target key start
LH: loop header
LB: loop body
LE: loop exit
PB: predicated region body
PF: predicated region fallthrough
CT: control target
= control target key end

     0   :  { %s325_s0 = inlined_call_operand.vmem [shape: bf16[64,32], index: 0, kind: input, shape index: {}]   ;;  %s326_s1 = inlined_call_operand.vmem [shape: bf16[32,256], index: 1, kind: input, shape index: {}]   ;;  %s327_s2 = inlined_call_operand.vmem [shape: f32[1,256], index: 2, kind: input, shape index: {}]   ;;  %s328_s3 = inlined_call_operand.hbm [shape: f32[64,256], index: 3, kind: output, shape index: {}]  }
   0x1   :  { %v205_v0 = vld [vmem:[%s326_s1 + $0x10] sm:$0xf]  ;;  %v226_v1 = vld [vmem:[%s326_s1 + $0x14] sm:$0xf0]  ;;  %v225_v2 = vld [vmem:[%s326_s1 + $0x14] sm:$0xf] }
   0x2   :  { %v206_v3 = vor.u32 %v226_v1, %v205_v0  ;;  %v207_v4 = vld [vmem:[%s326_s1 + $0x18] sm:$0xf0]  ;;  %v197_v5 = vld [vmem:[%s326_s1] sm:$0xf]  ;;  %v224_v6 = vld [vmem:[%s326_s1 + $0x4] sm:$0xf0] }
   0x3   :  { %v210_v7 = vor.u32 %v225_v2, %v207_v4  ;;  %v223_v8 = vld [vmem:[%s326_s1 + $0x4] sm:$0xf]  ;;  %v199_v9 = vld [vmem:[%s326_s1 + $0x8] sm:$0xf0]  ;;  %v198_v10 = vor.u32 %v224_v6, %v197_v5 }
   0x4   :  { %93 = vmatpush.bf16.msra.mxu0 %v206_v3  ;;  %227 = vmatpush.bf16.msra.mxu2 %v206_v3  ;;  %v202_v11 = vor.u32 %v223_v8, %v199_v9 }
   0x5   :  { %122 = vmatpush.bf16.msra.mxu1 %v210_v7  ;;  %229 = vmatpush.bf16.msra.mxu3 %v210_v7 }
   0x6   :  { %8 = vsyncpa [#allocation3], 0  ;;  %v219_v12 = vld [vmem:[%s325_s0] sm:$0xff]  ;;  %v221_v13 = vld [vmem:[%s325_s0 + $0x10] sm:$0xff]  ;;  %vm74_vm0 = vcmask 261120   ;;  %s167_s12 = sshll.u32 %s328_s3, 4  ;;  %s168_s12 = int_to_ptr.hbm [resolvable:$true] %s167_s12 }
   0x7   :  { %v220_v14 = vld [vmem:[%s325_s0 + $0x8] sm:$0xff]  ;;  %v222_v15 = vld [vmem:[%s325_s0 + $0x18] sm:$0xff]  ;;  %v28_v16 = vld [vmem:[%s327_s2] sm:$0x3]  ;;  %s260_s0 = smov [#allocation2]   ;;  %s261_s13 = smov 256  }
   0x8   :  { %94 = vmatpush.bf16.msra.mxu0 %v198_v10  ;;  %228 = vmatpush.bf16.msra.mxu2 %v198_v10  ;;  %v30_v17 = vperm.slane %v28_v16, 0  ;;  %v31_v18 = vperm.slane %v28_v16, 1  ;;  %s165_s2 = sshll.u32 %s260_s0, 4  ;;  %s262_s14 = smov 16   ;;  %s166_s2 = int_to_ptr.vmem [resolvable:$true] %s165_s2 }
   0x9   :  { %123 = vmatpush.bf16.msra.mxu1 %v202_v11  ;;  %230 = vmatpush.bf16.msra.mxu3 %v202_v11 }
   0xb   :  { %211 = vmatmul.msk.bf16.vlgmr.msra.gmra.mxu0 %vm74_vm0, %v219_v12  ;;  %213 = vmatmul.msk.bf16.vlgmr.msra.gmra.mxu2 %vm74_vm0, %v221_v13 }
   0xc   :  { %215 = vmatmul.msk.bf16.vlgmr.msra.gmra.mxu1 %vm74_vm0, %v219_v12  ;;  %217 = vmatmul.msk.bf16.vlgmr.msra.gmra.mxu3 %vm74_vm0, %v221_v13 }
  0x1b   :  { %212 = vmatmul.msk.bf16.gmra.mxu0 %vm74_vm0, %v220_v14  ;;  %214 = vmatmul.msk.bf16.gmra.mxu2 %vm74_vm0, %v222_v15 }
  0x1c   :  { %216 = vmatmul.msk.bf16.gmra.mxu1 %vm74_vm0, %v220_v14  ;;  %218 = vmatmul.msk.bf16.gmra.mxu3 %vm74_vm0, %v222_v15 }
  0x88   :  { %v96_v19 = vpop.f32.mrf.mxu0 }
  0x89   :  { %v97_v20 = vadd.f32 %v96_v19, %v30_v17  ;;  %v125_v21 = vpop.f32.mrf.mxu1 }
  0x8a   :  { %v126_v22 = vadd.f32 %v125_v21, %v31_v18 }
  0x8b   :  { %145 = vst [vmem:[#allocation2] sm:$0xff] %v97_v20 }
  0x8c   :  { %146 = vst [vmem:[#allocation2 + $0x8] sm:$0xff] %v126_v22 }
  0x8e   :  { %v106_v23 = vpop.f32.mrf.mxu2 }
  0x8f   :  { %v107_v24 = vadd.f32 %v106_v23, %v30_v17  ;;  %v135_v25 = vpop.f32.mrf.mxu3 }
  0x90   :  { %v136_v26 = vadd.f32 %v135_v25, %v31_v18  ;;  %v98_v27 = vpop.f32.mrf.mxu0 }
  0x91   :  { %153 = vst [vmem:[#allocation2 + $0x40] sm:$0xff] %v107_v24  ;;  %v99_v28 = vadd.f32 %v98_v27, %v30_v17  ;;  %v127_v29 = vpop.f32.mrf.mxu1 }
  0x92   :  { %154 = vst [vmem:[#allocation2 + $0x48] sm:$0xff] %v136_v26  ;;  %v128_v30 = vadd.f32 %v127_v29, %v31_v18 }
  0x93   :  { %147 = vst [vmem:[#allocation2 + $0x10] sm:$0xff] %v99_v28 }
  0x94   :  { %148 = vst [vmem:[#allocation2 + $0x18] sm:$0xff] %v128_v30 }
  0x96   :  { %v108_v31 = vpop.f32.mrf.mxu2 }
  0x97   :  { %v109_v32 = vadd.f32 %v108_v31, %v30_v17  ;;  %v137_v33 = vpop.f32.mrf.mxu3 }
  0x98   :  { %v138_v34 = vadd.f32 %v137_v33, %v31_v18  ;;  %v101_v35 = vpop.f32.mrf.mxu0 }
  0x99   :  { %155 = vst [vmem:[#allocation2 + $0x50] sm:$0xff] %v109_v32  ;;  %v102_v36 = vadd.f32 %v101_v35, %v30_v17  ;;  %v130_v37 = vpop.f32.mrf.mxu1 }
  0x9a   :  { %156 = vst [vmem:[#allocation2 + $0x58] sm:$0xff] %v138_v34  ;;  %v131_v38 = vadd.f32 %v130_v37, %v31_v18 }
  0x9b   :  { %149 = vst [vmem:[#allocation2 + $0x20] sm:$0xff] %v102_v36 }
  0x9c   :  { %150 = vst [vmem:[#allocation2 + $0x28] sm:$0xff] %v131_v38 }
  0x9e   :  { %v111_v39 = vpop.f32.mrf.mxu2 }
  0x9f   :  { %v112_v40 = vadd.f32 %v111_v39, %v30_v17  ;;  %v140_v41 = vpop.f32.mrf.mxu3 }
  0xa0   :  { %v141_v42 = vadd.f32 %v140_v41, %v31_v18  ;;  %v103_v43 = vpop.f32.mrf.mxu0 }
  0xa1   :  { %157 = vst [vmem:[#allocation2 + $0x60] sm:$0xff] %v112_v40  ;;  %v104_v44 = vadd.f32 %v103_v43, %v30_v17  ;;  %v132_v45 = vpop.f32.mrf.mxu1 }
  0xa2   :  { %158 = vst [vmem:[#allocation2 + $0x68] sm:$0xff] %v141_v42  ;;  %v133_v46 = vadd.f32 %v132_v45, %v31_v18 }
  0xa3   :  { %151 = vst [vmem:[#allocation2 + $0x30] sm:$0xff] %v104_v44 }
  0xa4   :  { %152 = vst [vmem:[#allocation2 + $0x38] sm:$0xff] %v133_v46 }
  0xa6   :  { %v113_v47 = vpop.f32.mrf.mxu2 }
  0xa7   :  { %v114_v48 = vadd.f32 %v113_v47, %v30_v17  ;;  %v142_v49 = vpop.f32.mrf.mxu3 }
  0xa8   :  { %v143_v50 = vadd.f32 %v142_v49, %v31_v18 }
  0xa9   :  { %159 = vst [vmem:[#allocation2 + $0x70] sm:$0xff] %v114_v48 }
  0xaa   :  { %160 = vst [vmem:[#allocation2 + $0x78] sm:$0xff] %v143_v50 }
  0xab   :  { %173 = dma.vmem_to_hbm [thread:$0]  %s166_s2, 2048, %s168_s12, [#allocation3], %s261_s13, %s261_s13, %s262_s14  }
  0xac   :  { %258 = dma.done.wait [#allocation3], 2048  }
  0xad   :  { %259 = vsyncadd [#allocation3], 4294965248 }
  0xae   :  { %178 = vsyncpa [#allocation3], 1 }

</bundles_post_ra>
